<compile_context>
chip_gen: v7x
topology: tpu7x:2x2x1
jax: 0.10.0
libtpu: 0.0.40
codegen_flags: <defaults>
</compile_context>

<pallas_src>
import math
import functools

import jax
import jax.numpy as jnp
from jax import lax
from jax.experimental import pallas as pl
from jax.experimental.pallas import tpu as pltpu

D = 300          # emb_sz hardcoded in the PyTorch module
DH = D // 2      # 150 sinusoid frequencies
SQRT_D = math.sqrt(D)


def _round_up(x, m):
    return ((x + m - 1) // m) * m


def _embed_posenc_kernel(ids_ref, table_hbm, freq2_ref, out_ref,
                         gather_buf, gather_sem, *, tm, seq_len):
    """One TM-token tile per grid step.

    ids_ref    : (N_pad,) int32 flat token ids, scalar-prefetched into SMEM.
    table_hbm  : (V, D) f32 embedding table left in HBM (pl.ANY).
    freq2_ref  : (1, D) f32 = [freq, freq] (sin half / cos half share lanes).
    out_ref    : (TM, D) f32 output tile.
    gather_buf : (TM, D) f32 VMEM scratch holding the gathered embedding rows.
    gather_sem : DMA semaphore shared by the TM row copies of this step.
    """
    base = pl.program_id(0) * tm

    # 1) Issue the TM row-gather DMAs back-to-back (HBM table -> VMEM scratch).
    @pl.loop(0, tm)
    def _issue(r):
        row = ids_ref[base + r]
        pltpu.make_async_copy(
            table_hbm.at[pl.ds(row, 1), :],
            gather_buf.at[pl.ds(r, 1), :],
            gather_sem,
        ).start()

    # 2) While the gathers are in flight, build the (TM, D) positional
    #    encoding for this tile.  Ids were flattened row-major (b*S + s),
    #    so flat token index t sits at sequence position t % seq_len.
    rows = base + lax.broadcasted_iota(jnp.int32, (tm, 1), 0)        # (TM, 1)
    pos = (rows % seq_len).astype(jnp.float32)                       # (TM, 1)
    ang = pos * freq2_ref[...]                                       # (TM, D)
    col = lax.broadcasted_iota(jnp.int32, (tm, D), 1)
    enc = jnp.where(col < DH, jnp.sin(ang), jnp.cos(ang))            # (TM, D)

    # 3) Wait for the TM row copies (same-size waits on the shared semaphore;
    #    the src of the wait descriptor is a dummy, only shape/sem matter).
    @pl.loop(0, tm)
    def _drain(r):
        pltpu.make_async_copy(
            table_hbm.at[pl.ds(0, 1), :],
            gather_buf.at[pl.ds(r, 1), :],
            gather_sem,
        ).wait()

    # 4) Fused scale + positional add; dropout(p=0.0) is the identity.
    out_ref[...] = gather_buf[...] * SQRT_D + enc


def transformer_embedding(inp_ids, table, freq, *, tile_tokens=256):
    """inp_ids: (B, S) int, table: (V, D) f32, freq: (D//2,) f32 -> (B, S, D) f32."""
    B, S = inp_ids.shape
    V, d = table.shape
    assert d == D and freq.shape == (DH,)
    n_tok = B * S

    # TM: multiple of 8 (sublane constraint), capped by tile_tokens.
    tm = min(_round_up(tile_tokens, 8), _round_up(n_tok, 8))
    n_pad = _round_up(n_tok, tm)

    ids_flat = inp_ids.reshape(-1).astype(jnp.int32)
    ids_flat = jnp.clip(ids_flat, 0, V - 1)                 # guard bad token ids
    ids_flat = jnp.pad(ids_flat, (0, n_pad - n_tok))        # tail rows use id 0

    freq2 = jnp.concatenate([freq, freq]).reshape(1, D).astype(jnp.float32)

    kernel = functools.partial(_embed_posenc_kernel, tm=tm, seq_len=S)

    out_flat = pl.pallas_call(
        kernel,
        out_shape=jax.ShapeDtypeStruct((n_pad, D), jnp.float32),
        grid_spec=pltpu.PrefetchScalarGridSpec(
            num_scalar_prefetch=1,                          # ids land in SMEM
            grid=(n_pad // tm,),
            in_specs=[
                pl.BlockSpec(memory_space=pl.ANY),          # table stays in HBM
                pl.BlockSpec((1, D), lambda i, ids: (0, 0)),
            ],
            out_specs=pl.BlockSpec((tm, D), lambda i, ids: (i, 0)),
            scratch_shapes=[
                pltpu.VMEM((tm, D), jnp.float32),
                pltpu.SemaphoreType.DMA,
            ],
        ),
        compiler_params=pltpu.CompilerParams(
            dimension_semantics=("parallel",)),
    )(ids_flat, table, freq2)

    return out_flat[:n_tok].reshape(B, S, D)


def _reference(inp_ids, table, freq):
    """Pure-JAX reference mirroring the PyTorch forward."""
    S = inp_ids.shape[1]
    pos = jnp.arange(S, dtype=jnp.float32)
    ang = pos[:, None] * freq[None, :]                            # torch.ger
    enc = jnp.concatenate([jnp.sin(ang), jnp.cos(ang)], axis=-1)  # (S, D)
    return table[inp_ids] * math.sqrt(D) + enc[None, :, :]


if __name__ == "__main__":
    key = jax.random.PRNGKey(0)
    k_tab, k_ids1, k_ids2 = jax.random.split(key, 3)

    # registered buffer: freq = 1 / 10000 ** (arange(0, 300, 2) / 300)
    freq = 1.0 / (10000.0 ** (jnp.arange(0.0, D, 2.0, dtype=jnp.float32) / D))

    # deterministic synthetic nn.Embedding(V, 300) weight + token ids
    V, B, S = 32, 2, 8
    table = jax.random.normal(k_tab, (V, D), dtype=jnp.float32)
    ids = jax.random.randint(k_ids1, (B, S), 0, V, dtype=jnp.int32)

    # --- small case (single tile) ---
    out = jax.block_until_ready(transformer_embedding(ids, table, freq))
    ref = _reference(ids, table, freq)
    assert out.shape == (B, S, D), out.shape
    assert jnp.allclose(out, ref, atol=1e-4, rtol=1e-4), "mismatch (single tile)"

    # --- multi-tile case: tiles cross batch boundaries, padded tail ---
    B2, S2 = 3, 40
    ids2 = jax.random.randint(k_ids2, (B2, S2), 0, V, dtype=jnp.int32)
    out2 = jax.block_until_ready(
        transformer_embedding(ids2, table, freq, tile_tokens=64))
    ref2 = _reference(ids2, table, freq)
    assert out2.shape == (B2, S2, D), out2.shape
    assert jnp.allclose(out2, ref2, atol=1e-4, rtol=1e-4), "mismatch (multi tile)"

    print("KERNEL_OK")
</pallas_src>

<mosaic_0001>
module attributes {stable_mosaic.version = 11 : i64} {
  func.func @_embed_posenc_kernel(%arg0: i32, %arg1: memref<16xi32, #tpu.memory_space<smem>>, %arg2: memref<32x300xf32, #tpu.memory_space<any>>, %arg3: memref<1x300xf32, #tpu.memory_space<vmem>>, %arg4: memref<16x300xf32, #tpu.memory_space<vmem>>, %arg5: memref<16x300xf32, #tpu.memory_space<vmem>>, %arg6: memref<!tpu.dma_semaphore, #tpu.memory_space<semaphore_mem>>) attributes {dimension_semantics = [#tpu.dimension_semantics<parallel>], iteration_bounds = array<i64: 1>, scalar_prefetch = 1 : i64, scratch_operands = 2 : i64, tpu.core_type = #tpu.core_type<tc>, window_params = [{}, {pipeline_mode = #tpu.pipeline_mode<synchronous>, transform_indices = @transform_1, window_bounds = array<i64: 1, 300>}, {transform_indices = @transform_2, window_bounds = array<i64: 16, 300>}]} {
    %c16_i32 = arith.constant 16 : i32
    %0 = arith.muli %arg0, %c16_i32 : i32
    %c0_i32 = arith.constant 0 : i32
    %c16_i32_0 = arith.constant 16 : i32
    %1 = arith.addi %c0_i32, %c16_i32_0 : i32
    %c1_i32 = arith.constant 1 : i32
    scf.for %arg7 = %c0_i32 to %1 step %c1_i32  : i32 {
      %c1_i32_16 = arith.constant 1 : i32
      %38 = arith.muli %arg7, %c1_i32_16 : i32
      %c0_i32_17 = arith.constant 0 : i32
      %39 = arith.addi %c0_i32_17, %38 : i32
      %40 = arith.addi %0, %39 : i32
      %41 = arith.index_cast %40 : i32 to index
      %42 = memref.load %arg1[%41] : memref<16xi32, #tpu.memory_space<smem>>
      %c0_i32_18 = arith.constant 0 : i32
      %43 = tpu.memref_slice %arg2[%42, %c0_i32_18] : memref<32x300xf32, #tpu.memory_space<any>> -> memref<1x300xf32, #tpu.memory_space<any>>
      %c0_i32_19 = arith.constant 0 : i32
      %44 = tpu.memref_slice %arg5[%39, %c0_i32_19] : memref<16x300xf32, #tpu.memory_space<vmem>> -> memref<1x300xf32, #tpu.memory_space<vmem>>
      tpu.enqueue_dma source(%43 : memref<1x300xf32, #tpu.memory_space<any>>) target(%44 : memref<1x300xf32, #tpu.memory_space<vmem>>) target_semaphore(%arg6 : memref<!tpu.dma_semaphore, #tpu.memory_space<semaphore_mem>>)
    }
    %c16_i32_1 = arith.constant 16 : i32
    %2 = tpu.iota {dimensions = array<i32: 0>} : vector<16x1xi32>
    %3 = vector.broadcast %0 : i32 to vector<16x1xi32>
    %4 = arith.addi %3, %2 : vector<16x1xi32>
    %c8_i32 = arith.constant 8 : i32
    %c0_i32_2 = arith.constant 0 : i32
    %5 = arith.cmpi eq, %c8_i32, %c0_i32_2 : i32
    %c1_i32_3 = arith.constant 1 : i32
    %6 = arith.select %5, %c1_i32_3, %c8_i32 : i32
    %7 = vector.broadcast %6 : i32 to vector<16x1xi32>
    %8 = arith.remsi %4, %7 : vector<16x1xi32>
    %c0_i32_4 = arith.constant 0 : i32
    %9 = vector.broadcast %c0_i32_4 : i32 to vector<16x1xi32>
    %10 = arith.cmpi ne, %8, %9 : vector<16x1xi32>
    %c0_i32_5 = arith.constant 0 : i32
    %11 = vector.broadcast %c0_i32_5 : i32 to vector<16x1xi32>
    %12 = arith.cmpi slt, %8, %11 : vector<16x1xi32>
    %c0_i32_6 = arith.constant 0 : i32
    %13 = arith.cmpi slt, %6, %c0_i32_6 : i32
    %14 = vector.broadcast %13 : i1 to vector<16x1xi1>
    %15 = vector.broadcast %14 : vector<16x1xi1> to vector<16x1xi1>
    %16 = arith.xori %12, %15 : vector<16x1xi1>
    %17 = arith.andi %16, %10 : vector<16x1xi1>
    %18 = vector.broadcast %6 : i32 to vector<16x1xi32>
    %19 = arith.addi %8, %18 : vector<16x1xi32>
    %20 = arith.select %17, %19, %8 : vector<16x1xi1>, vector<16x1xi32>
    %21 = arith.sitofp %20 : vector<16x1xi32> to vector<16x1xf32>
    %c0 = arith.constant 0 : index
    %c0_7 = arith.constant 0 : index
    %22 = vector.load %arg3[%c0, %c0_7] : memref<1x300xf32, #tpu.memory_space<vmem>>, vector<1x300xf32>
    %23 = vector.broadcast %21 : vector<16x1xf32> to vector<16x300xf32>
    %24 = vector.broadcast %22 : vector<1x300xf32> to vector<16x300xf32>
    %25 = arith.mulf %23, %24 : vector<16x300xf32>
    %26 = tpu.iota {dimensions = array<i32: 1>} : vector<16x300xi32>
    %c150_i32 = arith.constant 150 : i32
    %27 = vector.broadcast %c150_i32 : i32 to vector<16x300xi32>
    %28 = arith.cmpi slt, %26, %27 : vector<16x300xi32>
    %29 = math.sin %25 : vector<16x300xf32>
    %30 = math.cos %25 : vector<16x300xf32>
    %31 = arith.select %28, %29, %30 : vector<16x300xi1>, vector<16x300xf32>
    %c0_i32_8 = arith.constant 0 : i32
    %c16_i32_9 = arith.constant 16 : i32
    %32 = arith.addi %c0_i32_8, %c16_i32_9 : i32
    %c1_i32_10 = arith.constant 1 : i32
    scf.for %arg7 = %c0_i32_8 to %32 step %c1_i32_10  : i32 {
      %c1_i32_16 = arith.constant 1 : i32
      %38 = arith.muli %arg7, %c1_i32_16 : i32
      %c0_i32_17 = arith.constant 0 : i32
      %39 = arith.addi %c0_i32_17, %38 : i32
      %c0_i32_18 = arith.constant 0 : i32
      %c0_i32_19 = arith.constant 0 : i32
      %40 = tpu.memref_slice %arg2[%c0_i32_18, %c0_i32_19] : memref<32x300xf32, #tpu.memory_space<any>> -> memref<1x300xf32, #tpu.memory_space<any>>
      %c0_i32_20 = arith.constant 0 : i32
      %41 = tpu.memref_slice %arg5[%39, %c0_i32_20] : memref<16x300xf32, #tpu.memory_space<vmem>> -> memref<1x300xf32, #tpu.memory_space<vmem>>
      tpu.wait_dma2 semaphore(%arg6 : memref<!tpu.dma_semaphore, #tpu.memory_space<semaphore_mem>>) src(%40 : memref<1x300xf32, #tpu.memory_space<any>>) dst(%41 : memref<1x300xf32, #tpu.memory_space<vmem>>)
    }
    %c16_i32_11 = arith.constant 16 : i32
    %c0_12 = arith.constant 0 : index
    %c0_13 = arith.constant 0 : index
    %33 = vector.load %arg5[%c0_12, %c0_13] : memref<16x300xf32, #tpu.memory_space<vmem>>, vector<16x300xf32>
    %cst = arith.constant 17.320509 : f32
    %34 = vector.broadcast %cst : f32 to vector<16x300xf32>
    %35 = arith.mulf %33, %34 : vector<16x300xf32>
    %36 = arith.addf %35, %31 : vector<16x300xf32>
    %c0_14 = arith.constant 0 : index
    %c0_15 = arith.constant 0 : index
    %37 = vector.load %arg4[%c0_14, %c0_15] : memref<16x300xf32, #tpu.memory_space<vmem>>, vector<16x300xf32>
    tpu.vector_store %arg4[%c0_14, %c0_15], %36 {strides = array<i32>} : memref<16x300xf32, #tpu.memory_space<vmem>>, vector<16x300xf32>,
    return
  }
  func.func @transform_1(%arg0: i32, %arg1: memref<16xi32, #tpu.memory_space<smem>>) -> (i32, i32) {
    %c0_i32 = arith.constant 0 : i32
    %c0_i32_0 = arith.constant 0 : i32
    %c0_i32_1 = arith.constant 0 : i32
    return %c0_i32, %c0_i32_0 : i32, i32
  }
  func.func @transform_2(%arg0: i32, %arg1: memref<16xi32, #tpu.memory_space<smem>>) -> (i32, i32) {
    %c0_i32 = arith.constant 0 : i32
    %c0_i32_0 = arith.constant 0 : i32
    return %arg0, %c0_i32 : i32, i32
  }
}

</mosaic_0001>

<bundles_post_ra>
// kernel: tpu_custom_call.1
= control target key start
LH: loop header
LB: loop body
LE: loop exit
PB: predicated region body
PF: predicated region fallthrough
CT: control target
= control target key end

     0   :  { %s2266_s0 = inlined_call_operand.hbm [shape: s32[16], index: 0, kind: input, shape index: {}]   ;;  %s2267_s1 = inlined_call_operand.hbm [shape: f32[32,300], index: 1, kind: input, shape index: {}]   ;;  %s2268_s2 = inlined_call_operand.vmem [shape: f32[1,300], index: 2, kind: input, shape index: {}]   ;;  %s2269_s3 = inlined_call_operand.hbm [shape: f32[16,300], index: 3, kind: output, shape index: {}]  }
   0x1   :  { %s1549_s14 = scalar_lea.hbm %s2266_s0, 16 }
   0x2   :  { %p1550_p0 = scmp.ne.s32.totalorder %s2266_s0, %s1549_s14  ;;  %p1553_p1 = scmp.lt.u32.totalorder %s1549_s14, %s2266_s0 }
   0x4   :  { %p1555_p2 = pnand %p1553_p1, %p1550_p0 }
   0x6   :  { %1558 = shalt.err (!%p1555_p2)  }
   0x7   :  { %s1627_s19 = smov [#allocation5]  }
   0x8   :  { %9 = dma.hbm_to_smem %s2266_s0, 16, %s1627_s19, [#allocation4] }
   0x9   :  { %1613 = dma.done.wait [#allocation4], 16 }
   0xa   :  { %1614 = vsyncadd [#allocation4], 4294967280 }
   0xb   :  { %11 = sfence }
   0xc   :  { %12 = vsyncpa [#allocation7], 0  ;;  %s1672_s22 = smov 0  }
   0xd LB: > { %s23_s23 = sld [smem:[#allocation5 + %s1621_s22]]  ;;  %s30_s24 = sshrl.u32 %s1621_s22, 3  ;;  %s1621_s22 = sphi %s1672_s22, %s21_s22  }
   0xe   : > { %s31_s25 = sand.u32 7, %s1621_s22   ;;  %s32_s26 = smul.u32 24, %s30_s24 }
   0xf   : > { %s1561_s13 = scalar_lea.hbm %s2267_s1, 1536 }
  0x10   : > { %s33_s27 = sadd.s32 %s32_s26, %s31_s25 }
  0x11   : > { %s34_s0 = scalar_lea.vmem [#allocation2], %s33_s27 }
  0x12   : > { %s36_s28 = sshll.u32 %s34_s0, 4  ;;  %s1680_s28 = int_to_ptr.vmem [resolvable:$true] %s36_s28 }
  0x13   : > { %s24_s29 = sshrl.u32 %s23_s23, 3  ;;  %s25_s30 = sand.u32 7, %s23_s23  }
  0x14   : > { %s26_s4 = smul.u32 24, %s24_s29 }
  0x16   : > { %s27_s5 = sadd.s32 %s26_s4, %s25_s30 }
  0x17   : > { %s1423_s6 = sshll.u32 %s27_s5, 4 }
  0x18   : > { %s29_s9 = scalar_lea.hbm %s2267_s1, %s1423_s6 }
  0x19   : > { %s1559_s10 = scalar_lea.hbm %s29_s9, 48  ;;  %p1562_p4 = scmp.lt.u32.totalorder %s29_s9, %s2267_s1 }
  0x1a   : > { %p1560_p3 = scmp.ne.s32.totalorder %s29_s9, %s1559_s10  ;;  %p1563_p5 = scmp.lt.u32.totalorder %s1561_s13, %s1559_s10 }
  0x1b   : > { %p1565_p7 = scmp.lt.u32.totalorder %s1559_s10, %s29_s9 }
  0x1c   : > { %p1564_p6 = por %p1563_p5, %p1562_p4 }
  0x1e   : > { %p1566_p8 = por %p1565_p7, %p1564_p6 }
  0x20   : > { %p1567_p9 = pnand %p1566_p8, %p1560_p3 }
  0x22   : > { %1570 = shalt.err (!%p1567_p9)  }
  0x23   : > { %s1571_s16 = scalar_lea.vmem %s1680_s28, 48  ;;  %s1628_s17 = smov [#allocation2]  }
  0x24   : > { %p1572_p10 = scmp.ne.s32.totalorder %s1680_s28, %s1571_s16  ;;  %s1573_s18 = sshll.u32 %s1628_s17, 4  ;;  %s1574_s18 = int_to_ptr.vmem [resolvable:$false] %s1573_s18 }
  0x25   : > { %s1575_s19 = scalar_lea.vmem %s1574_s18, 768  ;;  %p1576_p11 = scmp.lt.s32.totalorder %s1680_s28, %s1574_s18 }
  0x26   : > { %p1577_p12 = scmp.lt.s32.totalorder %s1575_s19, %s1571_s16 }
  0x28   : > { %p1578_p13 = por %p1577_p12, %p1576_p11 }
  0x2a   : > { %p1579_p0 = pnand %p1578_p13, %p1572_p10 }
  0x2c   : > { %1582 = shalt.err (!%p1579_p0)  }
  0x2d   : > { %s1629_s20 = smov 128   ;;  %s1630_s21 = smov 1  }
  0x2e   : > { %39 = dma.hbm_to_vmem [thread:$0]  %s29_s9, 48, %s1680_s28, [#allocation3], %s1629_s20, %s1629_s20, %s1630_s21 }
  0x2f   : > { %s21_s22 = sadd.s32 1, %s1621_s22  }
  0x30   : > { %p18_p1 = scmp.ge.s32.totalorder %s21_s22, 16  }
  0x31   :  { %v40_v0 = vlaneseq (%p18_p1)  ;;  %v1704_v2 = vld [vmem:[%s2268_s2] sm:$0x7] (%p18_p1)  ;;  %v1631_v45 = vmov (%p18_p1), 683565275   ;;  %v1632_v47 = vmov (%p18_p1), 2475754826  }
  0x32   :  { %20 = sbr.rel (!%p18_p1) target bundleno = 13 (0xd), region = 40  ;;  %v1633_v49 = vmov (%p18_p1), 2131351028   ;;  %v1634_v51 = vmov (%p18_p1), 2102212464   ;;  %s1623_s1 = smov (%p18_p1), 0  }
  0x33   :  { %v1699_v1 = vshrl.u32 (%p18_p1), %v40_v0, 7  ;;  %v1635_v53 = vmov (%p18_p1), 920167782   ;;  %v1636_v61 = vmov (%p18_p1), 1326507024  }
  0x35   :  { %v42_v3 = vadd.s32 (%p18_p1), 8, %v1699_v1  ;;  %v50_v4 = vand.u32 (%p18_p1), 7, %v1699_v1  ;;  %v76_v5 = vsub.s32 (%p18_p1), 0, %v1699_v1  ;;  %v80_v6 = vsub.s32 (%p18_p1), 1, %v1699_v1 }
  0x36   :  { %v84_v33 = vsub.s32 (%p18_p1), 2, %v1699_v1 }
  0x37   :  { %v57_v7 = vand.u32 (%p18_p1), 7, %v42_v3  ;;  %v1710_v8 = vcvt.s32.f32 (%p18_p1), %v50_v4  ;;  %v77_v9 = vrot.slane (%p18_p1), %v1704_v2, %v76_v5  ;;  %v81_v10 = vrot.slane (%p18_p1), %v1704_v2, %v80_v6 }
  0x39   :  { %v1714_v11 = vcvt.s32.f32 %v57_v7  ;;  %v1717_v12 = vmul.f32 %v77_v9, %v1710_v8  ;;  %v1720_v13 = vmul.f32 %v81_v10, %v1710_v8 }
  0x3b   :  { %v102_v14 = vand.u32 2147483647, %v1717_v12  ;;  %v1724_v15 = vmul.f32 %v77_v9, %v1714_v11  ;;  %v105_v16 = vand.u32 2139095040, %v1717_v12  ;;  %v206_v17 = vand.u32 2147483647, %v1720_v13 }
  0x3c   :  { %v209_v18 = vand.u32 2139095040, %v1720_v13  ;;  %v1737_v34 = vmul.f32 %v81_v10, %v1714_v11  ;;  %vm104_vm13 = vcmp.lt.s32.totalorder %v1717_v12, 0 }
  0x3d   :  { %v106_v19 = vshrl.u32 %v105_v16, 23  ;;  %v109_v20 = vand.u32 8388607, %v102_v14  ;;  %v213_v22 = vand.u32 8388607, %v206_v17  ;;  %v417_v24 = vand.u32 2139095040, %v1724_v15 }
  0x3e   :  { %v210_v21 = vshrl.u32 %v209_v18, 23  ;;  %v414_v31 = vand.u32 2147483647, %v1724_v15  ;;  %vm1861_vm14 = vcmp.le.f32.partialorder %v102_v14, 0.7853982 }
  0x3f   :  { %v1424_v23 = vadd.s32 4294967169, %v106_v19  ;;  %v110_v26 = vor.u32 8388608, %v109_v20  ;;  %v418_v28 = vshrl.u32 %v417_v24, 23  ;;  %v214_v29 = vor.u32 8388608, %v213_v22 }
  0x40   :  { %v1428_v25 = vadd.s32 4294967169, %v210_v21  ;;  %v1745_v42 = vand.u32 8388607, %v414_v31 }
  0x41   :  { %v112_v27 = vadd.s32 1, %v1424_v23  ;;  %v1436_v32 = vadd.s32 4294967169, %v418_v28  ;;  %v1739_v38 = vshll.u32 %v110_v26, 8  ;;  %v1741_v41 = vshll.u32 %v214_v29, 8 }
  0x42   :  { %v216_v30 = vadd.s32 1, %v1428_v25 }
  0x43   :  { %vm113_vm0 = vcmp.gt.s32.totalorder %v112_v27, 0  ;;  %v1747_v43 = vadd.s32 1, %v1436_v32 }
  0x44   :  { %v114_v35 = vsel %vm113_vm0, %v112_v27, 0  ;;  %vm217_vm1 = vcmp.gt.s32.totalorder %v216_v30, 0 }
  0x45   :  { %v115_v36 = vshrl.u32 %v114_v35, 5  ;;  %v116_v37 = vand.u32 31, %v114_v35  ;;  %v218_v39 = vsel %vm217_vm1, %v216_v30, 0  ;;  %vm425_vm11 = vcmp.gt.s32.totalorder %v1747_v43, 0 }
  0x46   :  { %v220_v40 = vand.u32 31, %v218_v39  ;;  %v1754_v55 = vshrl.u32 %v218_v39, 5 }
  0x47   :  { %v117_v44 = vsub.s32 32, %v116_v37  ;;  %v119_v46 = vshll.u32 %v1631_v45, %v116_v37  ;;  %v122_v48 = vshll.u32 %v1632_v47, %v116_v37  ;;  %v125_v50 = vshll.u32 %v1633_v49, %v116_v37 }
  0x48   :  { %v128_v52 = vshll.u32 %v1634_v51, %v116_v37  ;;  %v131_v54 = vshll.u32 %v1635_v53, %v116_v37  ;;  %vm134_vm2 = vcmp.lt.s32.totalorder %v115_v36, 1  ;;  %vm135_vm3 = vcmp.lt.s32.totalorder %v115_v36, 2 }
  0x49   :  { %v118_v56 = vshrl.u32 %v1631_v45, %v117_v44  ;;  %v120_v57 = vshrl.u32 %v1632_v47, %v117_v44  ;;  %v123_v58 = vshrl.u32 %v1633_v49, %v117_v44  ;;  %v126_v59 = vshrl.u32 %v1634_v51, %v117_v44 }
  0x4a   :  { %v129_v60 = vshrl.u32 %v1635_v53, %v117_v44  ;;  %v132_v62 = vshrl.u32 %v1636_v61, %v117_v44  ;;  %vm137_vm4 = vcmp.lt.s32.totalorder %v115_v36, 4  ;;  %v221_v5 = vsub.s32 32, %v220_v40 }
  0x4b   :  { %v121_v63 = vor.u32 %v120_v57, %v119_v46  ;;  %v124_v3 = vor.u32 %v123_v58, %v122_v48  ;;  %v127_v4 = vor.u32 %v126_v59, %v125_v50  ;;  %vm136_vm5 = vcmp.lt.s32.totalorder %v115_v36, 3 }
  0x4c   :  { %v130_v6 = vor.u32 %v129_v60, %v128_v52  ;;  %v133_v7 = vor.u32 %v132_v62, %v131_v54  ;;  %v223_v9 = vshll.u32 %v1631_v45, %v220_v40  ;;  %v226_v23 = vshll.u32 %v1632_v47, %v220_v40 }
  0x4d   :  { %v138_v10 = vsel %vm134_vm2, %v118_v56, %v121_v63  ;;  %v139_v16 = vsel %vm137_vm4, %v127_v4, 2102212464  ;;  %v142_v18 = vsel %vm134_vm2, %v121_v63, %v124_v3  ;;  %v146_v19 = vsel %vm134_vm2, %v124_v3, %v127_v4 }
  0x4e   :  { %v140_v20 = vsel %vm136_vm5, %v124_v3, %v139_v16  ;;  %v143_v21 = vsel %vm137_vm4, %v130_v6, 920167782  ;;  %v147_v22 = vsel %vm137_vm4, %v133_v7, 1326507024  ;;  %v222_v26 = vshrl.u32 %v1631_v45, %v221_v5 }
  0x4f   :  { %v144_v24 = vsel %vm136_vm5, %v127_v4, %v143_v21  ;;  %v148_v25 = vsel %vm136_vm5, %v130_v6, %v147_v22  ;;  %v224_v27 = vshrl.u32 %v1632_v47, %v221_v5  ;;  %v141_v28 = vsel %vm135_vm3, %v138_v10, %v140_v20 }
  0x50   :  { %v145_v29 = vsel %vm135_vm3, %v142_v18, %v144_v24  ;;  %v149_v30 = vsel %vm135_vm3, %v146_v19, %v148_v25  ;;  %v227_v32 = vshrl.u32 %v1633_v49, %v221_v5  ;;  %v229_v50 = vshll.u32 %v1633_v49, %v220_v40 }
  0x51   :  { %v1774_v35 = vmul.u32.u64.low %v1739_v38, %v149_v30  ;;  %v1775_v37 = vmul.u32.u64.high %v1739_v38, %v149_v30, %v1774_v35  ;;  %v1778_v39 = vmul.u32.u64.low %v1739_v38, %v145_v29  ;;  %v1779_v44 = vmul.u32.u64.high %v1739_v38, %v145_v29, %v1778_v39 }
  0x52   :  { %v225_v46 = vor.u32 %v224_v27, %v223_v9  ;;  %v228_v48 = vor.u32 %v227_v32, %v226_v23  ;;  %v230_v52 = vshrl.u32 %v1634_v51, %v221_v5  ;;  %v232_v36 = vshll.u32 %v1634_v51, %v220_v40 }
  0x53   :  { %v233_v54 = vshrl.u32 %v1635_v53, %v221_v5  ;;  %v235_v56 = vshll.u32 %v1635_v53, %v220_v40  ;;  %v236_v57 = vshrl.u32 %v1636_v61, %v221_v5  ;;  %v157_v58 = vmul.u32 %v1739_v38, %v141_v28 }
  0x54   :  { %v231_v59 = vor.u32 %v230_v52, %v229_v50  ;;  %vm238_vm6 = vcmp.lt.s32.totalorder %v1754_v55, 1  ;;  %vm239_vm7 = vcmp.lt.s32.totalorder %v1754_v55, 2  ;;  %vm159_vm8 = vc.u32 %v1775_v37, %v1778_v39 }
  0x55   :  { %v160_v60 = vadd.s32 1, %v1779_v44  ;;  %v234_v62 = vor.u32 %v233_v54, %v232_v36  ;;  %vm240_vm9 = vcmp.lt.s32.totalorder %v1754_v55, 3  ;;  %v237_v63 = vor.u32 %v236_v57, %v235_v56 }
  0x56   :  { %vm241_vm10 = vcmp.lt.s32.totalorder %v1754_v55, 4  ;;  %v242_v40 = vsel %vm238_vm6, %v222_v26, %v225_v46  ;;  %v246_v3 = vsel %vm238_vm6, %v225_v46, %v228_v48  ;;  %v250_v6 = vsel %vm238_vm6, %v228_v48, %v231_v59 }
  0x57   :  { %v161_v38 = vsel %vm159_vm8, %v160_v60, %v1779_v44  ;;  %v243_v4 = vsel %vm241_vm10, %v231_v59, 2102212464  ;;  %v247_v5 = vsel %vm241_vm10, %v234_v62, 920167782  ;;  %v251_v16 = vsel %vm241_vm10, %v237_v63, 1326507024 }
  0x58   :  { %v162_v7 = vadd.s32 %v161_v38, %v157_v58  ;;  %v244_v9 = vsel %vm240_vm9, %v228_v48, %v243_v4  ;;  %v248_v10 = vsel %vm240_vm9, %v231_v59, %v247_v5  ;;  %v252_v20 = vsel %vm240_vm9, %v234_v62, %v251_v16 }
  0x59   :  { %v245_v18 = vsel %vm239_vm7, %v242_v40, %v244_v9  ;;  %v249_v19 = vsel %vm239_vm7, %v246_v3, %v248_v10  ;;  %v253_v22 = vsel %vm239_vm7, %v250_v6, %v252_v20  ;;  %v426_v27 = vsel %vm425_vm11, %v1747_v43, 0 }
  0x5a   :  { %v163_v21 = vadd.s32 536870912, %v162_v7  ;;  %v1805_v23 = vmul.u32.u64.low %v1741_v41, %v249_v19  ;;  %v1806_v24 = vmul.u32.u64.high %v1741_v41, %v249_v19, %v1805_v23  ;;  %v1817_v28 = vrot.slane %v1704_v2, %v84_v33 }
  0x5b   :  { %v1810_v25 = vmul.u32.u64.low %v1741_v41, %v253_v22  ;;  %v1811_v26 = vmul.u32.u64.high %v1741_v41, %v253_v22, %v1810_v25  ;;  %v428_v30 = vand.u32 31, %v426_v27  ;;  %v261_v55 = vmul.u32 %v1741_v41, %v245_v18 }
  0x5c   :  { %v164_v29 = vshrl.u32 %v163_v21, 30  ;;  %v422_v32 = vor.u32 8388608, %v1745_v42  ;;  %v518_v35 = vand.u32 2147483647, %v1737_v34  ;;  %v521_v44 = vand.u32 2139095040, %v1737_v34 }
  0x5d   :  { %v264_v48 = vadd.s32 1, %v1806_v24  ;;  %v1825_v43 = vand.u32 127, %v40_v0  ;;  %vm263_vm12 = vc.u32 %v1811_v26, %v1805_v23  ;;  %v429_v1 = vsub.s32 32, %v428_v30 }
  0x5e   :  { %v165_v46 = vshll.u32 %v164_v29, 30  ;;  %v1831_v2 = vmul.f32 %v1817_v28, %v1710_v8  ;;  %v1837_v50 = vshll.u32 %v422_v32, 8  ;;  %v522_v52 = vshrl.u32 %v521_v44, 23 }
  0x5f   :  { %v265_v41 = vsel %vm263_vm12, %v264_v48, %v1806_v24  ;;  %v1841_v0 = vand.u32 8388607, %v518_v35  ;;  %v1844_v54 = vshrl.u32 %v426_v27, 5  ;;  %v431_v8 = vshll.u32 %v1631_v45, %v428_v30 }
  0x60   :  { %v1834_v33 = vsub.s32 %v162_v7, %v165_v46  ;;  %v266_v42 = vadd.s32 %v265_v41, %v261_v55  ;;  %v434_v56 = vshll.u32 %v1632_v47, %v428_v30  ;;  %v432_v58 = vshrl.u32 %v1632_v47, %v429_v1 }
  0x61   :  { %v435_v59 = vshrl.u32 %v1633_v49, %v429_v1  ;;  %v437_v60 = vshll.u32 %v1633_v49, %v428_v30  ;;  %v438_v63 = vshrl.u32 %v1634_v51, %v429_v1  ;;  %v440_v40 = vshll.u32 %v1634_v51, %v428_v30 }
  0x62   :  { %v168_v36 = vsub.s32 0, %v1834_v33  ;;  %v267_v57 = vadd.s32 536870912, %v266_v42  ;;  %v441_v3 = vshrl.u32 %v1635_v53, %v429_v1  ;;  %v188_v38 = vsub.s32 4, %v164_v29 }
  0x63   :  { %v443_v5 = vshll.u32 %v1635_v53, %v428_v30  ;;  %v444_v6 = vshrl.u32 %v1636_v61, %v429_v1  ;;  %v158_v9 = vadd.s32 %v1778_v39, %v1775_v37  ;;  %v1440_v16 = vadd.s32 4294967169, %v522_v52 }
  0x64   :  { %v1425_v62 = vmin.u32 %v168_v36, %v1834_v33  ;;  %v1855_v4 = vshrl.u32 %v267_v57, 30  ;;  %v526_v18 = vor.u32 8388608, %v1841_v0  ;;  %v430_v20 = vshrl.u32 %v1631_v45, %v429_v1 }
  0x65   :  { %v433_v21 = vor.u32 %v432_v58, %v431_v8  ;;  %v436_v22 = vor.u32 %v435_v59, %v434_v56  ;;  %v439_v25 = vor.u32 %v438_v63, %v437_v60  ;;  %v442_v27 = vor.u32 %v441_v3, %v440_v40 }
  0x66   :  { %v170_v10 = vclz %v1425_v62  ;;  %v269_v19 = vshll.u32 %v1855_v4, 30  ;;  %vm446_vm15 = vcmp.lt.s32.totalorder %v1844_v54, 1  ;;  %v189_v14 = vsel %vm104_vm13, %v188_v38, %v164_v29 }
  0x67   :  { %v445_v37 = vor.u32 %v444_v6, %v443_v5  ;;  %vm449_vm0 = vcmp.lt.s32.totalorder %v1844_v54, 4  ;;  %vm447_vm2 = vcmp.lt.s32.totalorder %v1844_v54, 2  ;;  %vm448_vm3 = vcmp.lt.s32.totalorder %v1844_v54, 3 }
  0x68   :  { %v1426_v24 = vadd.s32 4294967294, %v170_v10  ;;  %v1873_v30 = vsub.s32 %v266_v42, %v269_v19  ;;  %v451_v39 = vsel %vm449_vm0, %v439_v25, 2102212464  ;;  %v450_v44 = vsel %vm446_vm15, %v430_v20, %v433_v21 }
  0x69   :  { %v454_v29 = vsel %vm446_vm15, %v433_v21, %v436_v22  ;;  %v455_v41 = vsel %vm449_vm0, %v442_v27, 920167782  ;;  %v452_v52 = vsel %vm448_vm3, %v436_v22, %v451_v39  ;;  %v458_v8 = vsel %vm446_vm15, %v436_v22, %v439_v25 }
  0x6a   :  { %vm1427_vm1 = vcmp.lt.s32.totalorder %v1426_v24, 0  ;;  %v272_v32 = vsub.s32 0, %v1873_v30  ;;  %v456_v36 = vsel %vm448_vm3, %v439_v25, %v455_v41  ;;  %v459_v58 = vsel %vm449_vm0, %v445_v37, 1326507024 }
  0x6b   :  { %v173_v55 = vsel %vm1427_vm1, 0, %v1426_v24  ;;  %v191_v59 = vsel %vm1861_vm14, 0, %v189_v14  ;;  %vm208_vm4 = vcmp.lt.s32.totalorder %v1720_v13, 0  ;;  %v262_v60 = vadd.s32 %v1805_v23, %v1811_v26 }
  0x6c   :  { %v174_v46 = vsub.s32 32, %v173_v55  ;;  %v175_v48 = vshll.u32 %v1834_v33, %v173_v55  ;;  %v178_v1 = vsub.s32 4294967266, %v173_v55  ;;  %v1429_v42 = vmin.u32 %v272_v32, %v1873_v30 }
  0x6d   :  { %v457_v33 = vsel %vm447_vm2, %v454_v29, %v456_v36  ;;  %v528_v63 = vadd.s32 1, %v1440_v16  ;;  %v453_v38 = vsel %vm447_vm2, %v450_v44, %v452_v52  ;;  %v460_v5 = vsel %vm448_vm3, %v442_v27, %v459_v58 }
  0x6e   :  { %v176_v56 = vshrl.u32 %v158_v9, %v174_v46  ;;  %v179_v57 = vadd.s32 127, %v178_v1  ;;  %v274_v62 = vclz %v1429_v42  ;;  %v461_v9 = vsel %vm447_vm2, %v458_v8, %v460_v5 }
  0x6f   :  { %v1911_v10 = vmul.u32.u64.low %v1837_v50, %v457_v33  ;;  %v1912_v19 = vmul.u32.u64.high %v1837_v50, %v457_v33, %v1911_v10  ;;  %v1916_v16 = vmul.u32.u64.low %v1837_v50, %v461_v9  ;;  %v1917_v20 = vmul.u32.u64.high %v1837_v50, %v461_v9, %v1916_v16 }
  0x70   :  { %v177_v40 = vor.u32 %v176_v56, %v175_v48  ;;  %v180_v3 = vshll.u32 %v179_v57, 23  ;;  %v1430_v6 = vadd.s32 4294967294, %v274_v62  ;;  %v195_v21 = vadd.s32 3, %v191_v59 }
  0x71   :  { %v292_v22 = vsub.s32 4, %v1855_v4  ;;  %vm529_vm6 = vcmp.gt.s32.totalorder %v528_v63, 0  ;;  %v469_v54 = vmul.u32 %v1837_v50, %v453_v38  ;;  %vm1923_vm7 = vcmp.le.f32.partialorder %v206_v17, 0.7853982 }
  0x72   :  { %v181_v23 = vor.u32 4788187, %v180_v3  ;;  %v184_v26 = vcvt.s32.f32 %v177_v40  ;;  %vm1431_vm5 = vcmp.lt.s32.totalorder %v1430_v6, 0  ;;  %v530_v27 = vsel %vm529_vm6, %v528_v63, 0 }
  0x73   :  { %v277_v25 = vsel %vm1431_vm5, 0, %v1430_v6  ;;  %v472_v32 = vadd.s32 1, %v1912_v19  ;;  %vm471_vm8 = vc.u32 %v1917_v20, %v1911_v10  ;;  %v1933_v50 = vshll.u32 %v526_v18, 8 }
  0x74   :  { %v182_v24 = vand.u32 2147483647, %v181_v23  ;;  %v278_v37 = vsub.s32 32, %v277_v25  ;;  %v279_v39 = vshll.u32 %v1873_v30, %v277_v25  ;;  %v282_v55 = vsub.s32 4294967266, %v277_v25 }
  0x75   :  { %v932_v29 = vand.u32 2147483647, %v1831_v2  ;;  %v473_v48 = vsel %vm471_vm8, %v472_v32, %v1912_v19  ;;  %v532_v1 = vand.u32 31, %v530_v27  ;;  %v1937_v30 = vand.u32 3, %v195_v21 }
  0x76   :  { %v185_v44 = vmul.f32 %v184_v26, %v182_v24  ;;  %v280_v17 = vshrl.u32 %v262_v60, %v278_v37  ;;  %v283_v46 = vadd.s32 127, %v282_v55  ;;  %v293_v42 = vsel %vm208_vm4, %v292_v22, %v1855_v4 }
  0x77   :  { %v474_v52 = vadd.s32 %v473_v48, %v469_v54  ;;  %v1942_v0 = vshrl.u32 %v530_v27, 5  ;;  %v533_v18 = vsub.s32 32, %v532_v1  ;;  %v535_v33 = vshll.u32 %v1631_v45, %v532_v1 }
  0x78   :  { %v186_v41 = vxor.u32 2147483648, %v185_v44  ;;  %v281_v36 = vor.u32 %v280_v17, %v279_v39  ;;  %v284_v8 = vshll.u32 %v283_v46, 23  ;;  %v538_v58 = vshll.u32 %v1632_v47, %v532_v1 }
  0x79   :  { %v475_v57 = vadd.s32 536870912, %v474_v52  ;;  %v541_v62 = vshll.u32 %v1633_v49, %v532_v1  ;;  %v536_v40 = vshrl.u32 %v1632_v47, %v533_v18  ;;  %v539_v3 = vshrl.u32 %v1633_v49, %v533_v18 }
  0x7a   :  { %v187_v56 = vsel %vm104_vm13, %v186_v41, %v185_v44  ;;  %v285_v60 = vor.u32 4788187, %v284_v8  ;;  %v288_v4 = vcvt.s32.f32 %v281_v36  ;;  %v542_v5 = vshrl.u32 %v1634_v51, %v533_v18 }
  0x7b   :  { %v190_v59 = vsel %vm1861_vm14, %v1717_v12, %v187_v56  ;;  %v1952_v63 = vshrl.u32 %v475_v57, 30  ;;  %v544_v6 = vshll.u32 %v1634_v51, %v532_v1  ;;  %vm201_vm9 = vcmp.eq.s32.totalorder %v1937_v30, 2 }
  0x7c   :  { %1525 = vcosq.f32 %v190_v59  ;;  %v286_v38 = vand.u32 2147483647, %v285_v60  ;;  %v1961_v7 = vsel %vm1923_vm7, 0, %v293_v42  ;;  %vm550_vm10 = vcmp.lt.s32.totalorder %v1942_v0, 1 }
  0x7d   :  { %1527 = vsinq.f32 %v190_v59  ;;  %v477_v9 = vshll.u32 %v1952_v63, 30  ;;  %vm198_vm11 = vcmp.eq.s32.totalorder %v1937_v30, 0  ;;  %v534_v23 = vshrl.u32 %v1631_v45, %v533_v18 }
  0x7e   :  { %v289_v19 = vmul.f32 %v288_v4, %v286_v38  ;;  %v545_v26 = vshrl.u32 %v1635_v53, %v533_v18  ;;  %v547_v16 = vshll.u32 %v1635_v53, %v532_v1  ;;  %vm197_vm12 = vcmp.lt.s32.totalorder %v1937_v30, 2 }
  0x7f   :  { %v1970_v21 = vsub.s32 %v474_v52, %v477_v9  ;;  %v537_v22 = vor.u32 %v536_v40, %v535_v33  ;;  %v540_v24 = vor.u32 %v539_v3, %v538_v58  ;;  %v548_v25 = vshrl.u32 %v1636_v61, %v533_v18 }
  0x80   :  { %vm194_vm13 = vweird.f32 %v1717_v12  ;;  %v290_v54 = vxor.u32 2147483648, %v289_v19  ;;  %v543_v27 = vor.u32 %v542_v5, %v541_v62  ;;  %v546_v37 = vor.u32 %v545_v26, %v544_v6 }
  0x81   :  { %vm553_vm14 = vcmp.lt.s32.totalorder %v1942_v0, 4  ;;  %v299_v39 = vadd.s32 3, %v1961_v7  ;;  %vm416_vm15 = vcmp.lt.s32.totalorder %v1724_v15, 0  ;;  %v480_v55 = vsub.s32 0, %v1970_v21 }
  0x82   :  { %vm552_vm0 = vcmp.lt.s32.totalorder %v1942_v0, 3  ;;  %v935_v32 = vand.u32 2139095040, %v1831_v2  ;;  %v291_v44 = vsel %vm208_vm4, %v290_v54, %v289_v19  ;;  %v549_v17 = vor.u32 %v548_v25, %v547_v16 }
  0x83   :  { %v555_v46 = vsel %vm553_vm14, %v543_v27, 2102212464  ;;  %v559_v48 = vsel %vm553_vm14, %v546_v37, 920167782  ;;  %v294_v1 = vsel %vm1923_vm7, %v1720_v13, %v291_v44  ;;  %v1437_v41 = vmin.u32 %v480_v55, %v1970_v21 }
  0x84   :  { %vm551_vm1 = vcmp.lt.s32.totalorder %v1942_v0, 2  ;;  %v558_v42 = vsel %vm550_vm10, %v537_v22, %v540_v24  ;;  %1529 = vcosq.f32 %v294_v1  ;;  %v554_v52 = vsel %vm550_vm10, %v534_v23, %v537_v22 }
  0x85   :  { %v556_v36 = vsel %vm552_vm0, %v540_v24, %v555_v46  ;;  %v560_v8 = vsel %vm552_vm0, %v543_v27, %v559_v48  ;;  %1531 = vsinq.f32 %v294_v1  ;;  %v470_v14 = vadd.s32 %v1911_v10, %v1917_v20 }
  0x86   :  { %v1526_v18 = vpop.eup %1525  ;;  %v482_v56 = vclz %v1437_v41  ;;  %v562_v57 = vsel %vm550_vm10, %v540_v24, %v543_v27  ;;  %v500_v59 = vsub.s32 4, %v1952_v63  ;;  %v561_v60 = vsel %vm551_vm1, %v558_v42, %v560_v8 }
  0x87   :  { %v1528_v33 = vpop.eup %1527  ;;  %v202_v58 = vxor.u32 2147483648, %v1526_v18  ;;  %v563_v4 = vsel %vm553_vm14, %v549_v17, 1326507024  ;;  %v557_v3 = vsel %vm551_vm1, %v554_v52, %v556_v36  ;;  %vm2042_vm3 = vcmp.le.f32.partialorder %v414_v31, 0.7853982 }
  0x88   :  { %v199_v62 = vxor.u32 2147483648, %v1528_v33  ;;  %v1438_v40 = vadd.s32 4294967294, %v482_v56  ;;  %v564_v10 = vsel %vm552_vm0, %v546_v37, %v563_v4  ;;  %v501_v0 = vsel %vm416_vm15, %v500_v59, %v1952_v63 }
  0x89   :  { %v203_v20 = vsel %vm201_vm9, %v202_v58, %v1528_v33  ;;  %v565_v38 = vsel %vm551_vm1, %v562_v57, %v564_v10  ;;  %v2017_v5 = vmul.u32.u64.low %v1933_v50, %v561_v60  ;;  %v2018_v6 = vmul.u32.u64.high %v1933_v50, %v561_v60, %v2017_v5 }
  0x8a   :  { %v200_v9 = vsel %vm198_vm11, %v1526_v18, %v199_v62  ;;  %vm1439_vm2 = vcmp.lt.s32.totalorder %v1438_v40, 0  ;;  %v2023_v19 = vmul.u32.u64.low %v1933_v50, %v565_v38  ;;  %v2024_v23 = vmul.u32.u64.high %v1933_v50, %v565_v38, %v2023_v19 }
  0x8b   :  { %v204_v26 = vsel %vm197_vm12, %v200_v9, %v203_v20  ;;  %v485_v16 = vsel %vm1439_vm2, 0, %v1438_v40  ;;  %v573_v22 = vmul.u32 %v1933_v50, %v557_v3  ;;  %v2038_v37 = vadd.s32 128, %v1825_v43 }
  0x8c   :  { %v2034_v24 = vsel %vm194_vm13, nan, %v204_v26  ;;  %v486_v25 = vsub.s32 32, %v485_v16  ;;  %v487_v54 = vshll.u32 %v1970_v21, %v485_v16  ;;  %v490_v27 = vsub.s32 4294967266, %v485_v16 }
  0x8d   :  { %v576_v63 = vadd.s32 1, %v2018_v6  ;;  %v936_v50 = vshrl.u32 %v935_v32, 23  ;;  %v503_v44 = vsel %vm2042_vm3, 0, %v501_v0  ;;  %vm575_vm4 = vc.u32 %v2024_v23, %v2017_v5 }
  0x8e   :  { %v488_v55 = vshrl.u32 %v470_v14, %v486_v25  ;;  %v491_v12 = vadd.s32 127, %v490_v27  ;;  %v1530_v21 = vpop.eup %1529  ;;  %v300_v17 = vand.u32 3, %v299_v39  ;;  %v939_v31 = vand.u32 8388607, %v932_v29 }
  0x8f   :  { %v577_v43 = vsel %vm575_vm4, %v576_v63, %v2018_v6  ;;  %v1456_v46 = vadd.s32 4294967169, %v936_v50  ;;  %v1532_v48 = vpop.eup %1531  ;;  %v2055_v1 = vmul.f32 %v1817_v28, %v1714_v11  ;;  %v306_v52 = vxor.u32 2147483648, %v1530_v21 }
  0x90   :  { %v489_v32 = vor.u32 %v488_v55, %v487_v54  ;;  %v492_v41 = vshll.u32 %v491_v12, 23  ;;  %v578_v42 = vadd.s32 %v577_v43, %v573_v22  ;;  %v507_v36 = vadd.s32 3, %v503_v44 }
  0x91   :  { %v922_v8 = vand.u32 3, %v1961_v7  ;;  %v942_v18 = vadd.s32 1, %v1456_v46  ;;  %v303_v39 = vxor.u32 2147483648, %v1532_v48  ;;  %vm302_vm5 = vcmp.eq.s32.totalorder %v300_v17, 0 }
  0x92   :  { %v493_v14 = vor.u32 4788187, %v492_v41  ;;  %v496_v56 = vcvt.s32.f32 %v489_v32  ;;  %v579_v57 = vadd.s32 536870912, %v578_v42  ;;  %vm305_vm6 = vcmp.eq.s32.totalorder %v300_v17, 2 }
  0x93   :  { %v940_v33 = vor.u32 8388608, %v939_v31  ;;  %vm943_vm7 = vcmp.gt.s32.totalorder %v942_v18, 0  ;;  %vm298_vm8 = vweird.f32 %v1720_v13  ;;  %vm301_vm9 = vcmp.lt.s32.totalorder %v300_v17, 2 }
  0x94   :  { %v494_v11 = vand.u32 2147483647, %v493_v14  ;;  %v580_v28 = vshrl.u32 %v579_v57, 30  ;;  %v2059_v58 = vand.u32 3, %v507_v36  ;;  %vm924_vm10 = vcmp.eq.s32.totalorder %v922_v8, 0 }
  0x95   :  { %vm927_vm11 = vcmp.eq.s32.totalorder %v922_v8, 2  ;;  %v944_v59 = vsel %vm943_vm7, %v942_v18, 0  ;;  %v304_v7 = vsel %vm302_vm5, %v1530_v21, %v303_v39  ;;  %v307_v60 = vsel %vm305_vm6, %v306_v52, %v1532_v48 }
  0x96   :  { %v497_v4 = vmul.f32 %v496_v56, %v494_v11  ;;  %v581_v62 = vshll.u32 %v580_v28, 30  ;;  %vm520_vm12 = vcmp.lt.s32.totalorder %v1737_v34, 0  ;;  %v2063_v40 = vadd.s32 %v2017_v5, %v2024_v23 }
  0x97   :  { %vm923_vm13 = vcmp.lt.s32.totalorder %v922_v8, 2  ;;  %v946_v3 = vand.u32 31, %v944_v59  ;;  %v2065_v10 = vshll.u32 %v940_v33, 8  ;;  %v926_v6 = vsel %vm924_vm10, %v1530_v21, %v303_v39 }
  0x98   :  { %v498_v20 = vxor.u32 2147483648, %v497_v4  ;;  %v2067_v38 = vsub.s32 %v578_v42, %v581_v62  ;;  %v1241_v9 = vand.u32 2147483647, %v2055_v1  ;;  %v308_v19 = vsel %vm301_vm9, %v304_v7, %v307_v60 }
  0x99   :  { %v929_v26 = vsel %vm927_vm11, %v306_v52, %v1532_v48  ;;  %v2072_v16 = vshrl.u32 %v944_v59, 5  ;;  %v947_v0 = vsub.s32 32, %v946_v3  ;;  %v949_v22 = vshll.u32 %v1631_v45, %v946_v3 }
  0x9a   :  { %v499_v5 = vsel %vm416_vm15, %v498_v20, %v497_v4  ;;  %v584_v23 = vsub.s32 0, %v2067_v38  ;;  %v952_v25 = vshll.u32 %v1632_v47, %v946_v3  ;;  %v955_v50 = vshll.u32 %v1633_v49, %v946_v3 }
  0x9b   :  { %v502_v54 = vsel %vm2042_vm3, %v1724_v15, %v499_v5  ;;  %v950_v27 = vshrl.u32 %v1632_v47, %v947_v0  ;;  %v953_v63 = vshrl.u32 %v1633_v49, %v947_v0  ;;  %v604_v12 = vsub.s32 4, %v580_v28 }
  0x9c   :  { %1533 = vcosq.f32 %v502_v54  ;;  %v1441_v55 = vmin.u32 %v584_v23, %v2067_v38  ;;  %v956_v44 = vshrl.u32 %v1634_v51, %v947_v0  ;;  %v2089_v21 = vsel %vm298_vm8, nan, %v308_v19 }
  0x9d   :  { %1535 = vsinq.f32 %v502_v54  ;;  %v930_v30 = vsel %vm923_vm13, %v926_v6, %v929_v26  ;;  %v958_v17 = vshll.u32 %v1634_v51, %v946_v3  ;;  %vm513_vm14 = vcmp.eq.s32.totalorder %v2059_v58, 2 }
  0x9e   :  { %v586_v43 = vclz %v1441_v55  ;;  %v951_v46 = vor.u32 %v950_v27, %v949_v22  ;;  %v954_v31 = vor.u32 %v953_v63, %v952_v25  ;;  %vm964_vm15 = vcmp.lt.s32.totalorder %v2072_v16, 1 }
  0x9f   :  { %vm510_vm0 = vcmp.eq.s32.totalorder %v2059_v58, 0  ;;  %v957_v48 = vor.u32 %v956_v44, %v955_v50  ;;  %v959_v32 = vshrl.u32 %v1635_v53, %v947_v0  ;;  %v961_v41 = vshll.u32 %v1635_v53, %v946_v3 }
  0xa0   :  { %v962_v42 = vshrl.u32 %v1636_v61, %v947_v0  ;;  %vm509_vm1 = vcmp.lt.s32.totalorder %v2059_v58, 2  ;;  %vm2102_vm2 = vcmp.le.f32.partialorder %v518_v35, 0.7853982  ;;  %v1442_v36 = vadd.s32 4294967294, %v586_v43 }
  0xa1   :  { %v605_v8 = vsel %vm520_vm12, %v604_v12, %v580_v28  ;;  %vm967_vm3 = vcmp.lt.s32.totalorder %v2072_v16, 4  ;;  %v1244_v18 = vand.u32 2139095040, %v2055_v1  ;;  %vm506_vm4 = vweird.f32 %v1724_v15 }
  0xa2   :  { %v948_v39 = vshrl.u32 %v1631_v45, %v947_v0  ;;  %v960_v14 = vor.u32 %v959_v32, %v958_v17  ;;  %v963_v56 = vor.u32 %v962_v42, %v961_v41  ;;  %vm966_vm5 = vcmp.lt.s32.totalorder %v2072_v16, 3 }
  0xa3   :  { %vm100_vm6 = vcmp.lt.s32.totalorder %v2038_v37, 150  ;;  %vm1443_vm7 = vcmp.lt.s32.totalorder %v1442_v36, 0  ;;  %vm965_vm9 = vcmp.lt.s32.totalorder %v2072_v16, 2  ;;  %v969_v35 = vsel %vm967_vm3, %v957_v48, 2102212464 }
  0xa4   :  { %v972_v57 = vsel %vm964_vm15, %v951_v46, %v954_v31  ;;  %v589_v33 = vsel %vm1443_vm7, 0, %v1442_v36  ;;  %v973_v11 = vsel %vm967_vm3, %v960_v14, 920167782  ;;  %v976_v28 = vsel %vm964_vm15, %v954_v31, %v957_v48 }
  0xa5   :  { %v977_v59 = vsel %vm967_vm3, %v963_v56, 1326507024  ;;  %v590_v7 = vsub.s32 32, %v589_v33  ;;  %v591_v60 = vshll.u32 %v2067_v38, %v589_v33  ;;  %v594_v4 = vsub.s32 4294967266, %v589_v33 }
  0xa6   :  { %v974_v62 = vsel %vm966_vm5, %v957_v48, %v973_v11  ;;  %v968_v3 = vsel %vm964_vm15, %v948_v39, %v951_v46  ;;  %v970_v20 = vsel %vm966_vm5, %v954_v31, %v969_v35  ;;  %v978_v19 = vsel %vm966_vm5, %v960_v14, %v977_v59  ;;  %v1534_v26 = vpop.eup %1533 }
  0xa7   :  { %v975_v6 = vsel %vm965_vm9, %v972_v57, %v974_v62  ;;  %v592_v0 = vshrl.u32 %v2063_v40, %v590_v7  ;;  %v595_v38 = vadd.s32 127, %v594_v4  ;;  %v979_v5 = vsel %vm965_vm9, %v976_v28, %v978_v19  ;;  %v1536_v22 = vpop.eup %1535 }
  0xa8   :  { %v1245_v23 = vshrl.u32 %v1244_v18, 23  ;;  %v514_v25 = vxor.u32 2147483648, %v1534_v26  ;;  %v931_v54 = vsel %vm298_vm8, nan, %v930_v30  ;;  %v511_v50 = vxor.u32 2147483648, %v1536_v22 }
  0xa9   :  { %v2136_v27 = vmul.u32.u64.low %v2065_v10, %v979_v5  ;;  %v2137_v63 = vmul.u32.u64.high %v2065_v10, %v979_v5, %v2136_v27  ;;  %v593_v55 = vor.u32 %v592_v0, %v591_v60  ;;  %v596_v12 = vshll.u32 %v595_v38, 23 }
  0xaa   :  { %v971_v40 = vsel %vm965_vm9, %v968_v3, %v970_v20  ;;  %v515_v44 = vsel %vm513_vm14, %v514_v25, %v1536_v22  ;;  %v607_v17 = vsel %vm2102_vm2, 0, %v605_v8  ;;  %v512_v30 = vsel %vm510_vm0, %v1534_v26, %v511_v50 }
  0xab   :  { %v2146_v43 = vmul.u32.u64.low %v2065_v10, %v975_v6  ;;  %v2147_v13 = vmul.u32.u64.high %v2065_v10, %v975_v6, %v2146_v43  ;;  %v597_v46 = vor.u32 4788187, %v596_v12  ;;  %v600_v31 = vcvt.s32.f32 %v593_v55 }
  0xac   :  { %v1468_v48 = vadd.s32 4294967169, %v1245_v23  ;;  %v516_v16 = vsel %vm509_vm1, %v512_v30, %v515_v44  ;;  %v987_v32 = vmul.u32 %v2065_v10, %v971_v40  ;;  %v611_v8 = vadd.s32 3, %v607_v17 }
  0xad   :  { %v2157_v41 = vsel %vm506_vm4, nan, %v516_v16  ;;  %v598_v42 = vand.u32 2147483647, %v597_v46  ;;  %vm989_vm8 = vc.u32 %v2137_v63, %v2146_v43  ;;  %v990_v18 = vadd.s32 1, %v2147_v13 }
  0xae   :  { %v1251_v36 = vadd.s32 1, %v1468_v48  ;;  %v1248_v39 = vand.u32 8388607, %v1241_v9  ;;  %v2167_v58 = vsel %vm100_vm6, %v2089_v21, %v931_v54  ;;  %v2170_v33 = vand.u32 3, %v611_v8 }
  0xaf   :  { %v601_v10 = vmul.f32 %v600_v31, %v598_v42  ;;  %v991_v15 = vsel %vm989_vm8, %v990_v18, %v2147_v13  ;;  %v1231_v50 = vand.u32 3, %v607_v17  ;;  %vm610_vm5 = vweird.f32 %v1737_v34 }
  0xb0   :  { %vm1252_vm10 = vcmp.gt.s32.totalorder %v1251_v36, 0  ;;  %v992_v35 = vadd.s32 %v991_v15, %v987_v32  ;;  %v1249_v11 = vor.u32 8388608, %v1248_v39  ;;  %vm613_vm11 = vcmp.lt.s32.totalorder %v2170_v33, 2 }
  0xb1   :  { %v1253_v14 = vsel %vm1252_vm10, %v1251_v36, 0  ;;  %v602_v56 = vxor.u32 2147483648, %v601_v10  ;;  %vm614_vm13 = vcmp.eq.s32.totalorder %v2170_v33, 0  ;;  %vm617_vm1 = vcmp.eq.s32.totalorder %v2170_v33, 2 }
  0xb2   :  { %v1255_v57 = vand.u32 31, %v1253_v14  ;;  %v993_v59 = vadd.s32 536870912, %v992_v35  ;;  %v1254_v7 = vshrl.u32 %v1253_v14, 5  ;;  %v1289_v55 = vshll.u32 %v1249_v11, 8 }
  0xb3   :  { %v603_v28 = vsel %vm520_vm12, %v602_v56, %v601_v10  ;;  %vm1233_vm3 = vcmp.eq.s32.totalorder %v1231_v50, 0  ;;  %vm1236_vm4 = vcmp.eq.s32.totalorder %v1231_v50, 2  ;;  %v988_v11 = vadd.s32 %v2146_v43, %v2137_v63 }
  0xb4   :  { %v1256_v60 = vsub.s32 32, %v1255_v57  ;;  %v606_v21 = vsel %vm2102_vm2, %v1737_v34, %v603_v28  ;;  %v1258_v4 = vshll.u32 %v1631_v45, %v1255_v57  ;;  %v1261_v62 = vshll.u32 %v1632_v47, %v1255_v57 }
  0xb5   :  { %v1267_v3 = vshll.u32 %v1634_v51, %v1255_v57  ;;  %1537 = vcosq.f32 %v606_v21  ;;  %v2180_v20 = vshrl.u32 %v993_v59, 30  ;;  %v1264_v19 = vshll.u32 %v1633_v49, %v1255_v57 }
  0xb6   :  { %v1259_v6 = vshrl.u32 %v1632_v47, %v1256_v60  ;;  %1539 = vsinq.f32 %v606_v21  ;;  %v1262_v26 = vshrl.u32 %v1633_v49, %v1256_v60  ;;  %v1265_v0 = vshrl.u32 %v1634_v51, %v1256_v60 }
  0xb7   :  { %v1268_v52 = vshrl.u32 %v1635_v53, %v1256_v60  ;;  %v995_v38 = vshll.u32 %v2180_v20, 30  ;;  %v1257_v5 = vshrl.u32 %v1631_v45, %v1256_v60  ;;  %v1270_v23 = vshll.u32 %v1635_v53, %v1255_v57 }
  0xb8   :  { %v1260_v22 = vor.u32 %v1259_v6, %v1258_v4  ;;  %v1263_v25 = vor.u32 %v1262_v26, %v1261_v62  ;;  %v1271_v47 = vshrl.u32 %v1636_v61, %v1256_v60  ;;  %v1266_v49 = vor.u32 %v1265_v0, %v1264_v19 }
  0xb9   :  { %v1269_v54 = vor.u32 %v1268_v52, %v1267_v3  ;;  %v996_v27 = vsub.s32 %v992_v35, %v995_v38  ;;  %vm1273_vm12 = vcmp.lt.s32.totalorder %v1254_v7, 1  ;;  %vm1276_vm14 = vcmp.lt.s32.totalorder %v1254_v7, 4 }
  0xba   :  { %v1272_v51 = vor.u32 %v1271_v47, %v1270_v23  ;;  %vm1274_vm15 = vcmp.lt.s32.totalorder %v1254_v7, 2  ;;  %vm1275_vm0 = vcmp.lt.s32.totalorder %v1254_v7, 3  ;;  %v1278_v45 = vsel %vm1276_vm14, %v1266_v49, 2102212464 }
  0xbb   :  { %v998_v12 = vsub.s32 0, %v996_v27  ;;  %v1277_v53 = vsel %vm1273_vm12, %v1257_v5, %v1260_v22  ;;  %v1279_v61 = vsel %vm1275_vm0, %v1263_v25, %v1278_v45  ;;  %v1281_v40 = vsel %vm1273_vm12, %v1260_v22, %v1263_v25 }
  0xbc   :  { %v1282_v44 = vsel %vm1276_vm14, %v1269_v54, 920167782  ;;  %vm1232_vm2 = vcmp.lt.s32.totalorder %v1231_v50, 2  ;;  %v1285_v13 = vsel %vm1273_vm12, %v1263_v25, %v1266_v49  ;;  %v1286_v46 = vsel %vm1276_vm14, %v1272_v51, 1326507024 }
  0xbd   :  { %v1457_v17 = vmin.u32 %v998_v12, %v996_v27  ;;  %v1283_v30 = vsel %vm1275_vm0, %v1266_v49, %v1282_v44  ;;  %v1280_v16 = vsel %vm1274_vm15, %v1277_v53, %v1279_v61  ;;  %v1287_v42 = vsel %vm1275_vm0, %v1269_v54, %v1286_v46 }
  0xbe   :  { %v1284_v32 = vsel %vm1274_vm15, %v1281_v40, %v1283_v30  ;;  %v1288_v18 = vsel %vm1274_vm15, %v1285_v13, %v1287_v42  ;;  %v1296_v60 = vmul.u32 %v1289_v55, %v1280_v16  ;;  %vm934_vm8 = vcmp.lt.s32.totalorder %v1831_v2, 0 }
  0xbf   :  { %v1538_v31 = vpop.eup %1537  ;;  %v1000_v48 = vclz %v1457_v17  ;;  %v2206_v39 = vmul.u32.u64.low %v1289_v55, %v1284_v32  ;;  %v2207_v10 = vmul.u32.u64.high %v1289_v55, %v1284_v32, %v2206_v39  ;;  %vm933_vm10 = vcmp.le.f32.partialorder %v932_v29, 0.7853982 }
  0xc0   :  { %v1540_v36 = vpop.eup %1539  ;;  %v618_v8 = vxor.u32 2147483648, %v1538_v31  ;;  %v2209_v56 = vmul.u32.u64.low %v1289_v55, %v1288_v18  ;;  %v2210_v35 = vmul.u32.u64.high %v1289_v55, %v1288_v18, %v2209_v56  ;;  %v1018_v37 = vsub.s32 4, %v2180_v20 }
  0xc1   :  { %v615_v15 = vxor.u32 2147483648, %v1540_v36  ;;  %v1458_v14 = vadd.s32 4294967294, %v1000_v48  ;;  %v1299_v3 = vadd.s32 1, %v2207_v10  ;;  %vm1024_vm14 = vweird.f32 %v1831_v2 }
  0xc2   :  { %v619_v57 = vsel %vm617_vm1, %v618_v8, %v1540_v36  ;;  %v1238_v28 = vsel %vm1236_vm4, %v618_v8, %v1540_v36  ;;  %vm1298_vm9 = vc.u32 %v2210_v35, %v2206_v39  ;;  %v1019_v40 = vsel %vm934_vm8, %v1018_v37, %v2180_v20 }
  0xc3   :  { %v616_v59 = vsel %vm614_vm13, %v1538_v31, %v615_v15  ;;  %vm1459_vm7 = vcmp.lt.s32.totalorder %v1458_v14, 0  ;;  %v1235_v7 = vsel %vm1233_vm3, %v1538_v31, %v615_v15  ;;  %v1300_v33 = vsel %vm1298_vm9, %v1299_v3, %v2207_v10 }
  0xc4   :  { %v620_v21 = vsel %vm613_vm11, %v616_v59, %v619_v57  ;;  %v1003_v4 = vsel %vm1459_vm7, 0, %v1458_v14  ;;  %v1239_v62 = vsel %vm1232_vm2, %v1235_v7, %v1238_v28  ;;  %v1301_v5 = vadd.s32 %v1300_v33, %v1296_v60 }
  0xc5   :  { %v621_v63 = vsel %vm610_vm5, nan, %v620_v21  ;;  %v1004_v43 = vsub.s32 32, %v1003_v4  ;;  %v1005_v6 = vshll.u32 %v996_v27, %v1003_v4  ;;  %v1008_v19 = vsub.s32 4294967266, %v1003_v4 }
  0xc6   :  { %v1240_v26 = vsel %vm610_vm5, nan, %v1239_v62  ;;  %v1302_v25 = vadd.s32 536870912, %v1301_v5  ;;  %v1021_v17 = vsel %vm933_vm10, 0, %v1019_v40  ;;  %v1297_v30 = vadd.s32 %v2206_v39, %v2210_v35 }
  0xc7   :  { %v1006_v0 = vshrl.u32 %v988_v11, %v1004_v43  ;;  %v1009_v52 = vadd.s32 127, %v1008_v19  ;;  %v2233_v38 = vsel %vm100_vm6, %v621_v63, %v1240_v26  ;;  %v1025_v46 = vand.u32 3, %v1021_v17 }
  0xc8   :  { %v1303_v27 = vshrl.u32 %v1302_v25, 30  ;;  %vm1243_vm15 = vcmp.lt.s32.totalorder %v2055_v1, 0  ;;  %vm1242_vm0 = vcmp.le.f32.partialorder %v1241_v9, 0.7853982  ;;  %vm1333_vm4 = vweird.f32 %v2055_v1 }
  0xc9   :  { %v1007_v23 = vor.u32 %v1006_v0, %v1005_v6  ;;  %v1010_v22 = vshll.u32 %v1009_v52, 23  ;;  %vm1030_vm11 = vcmp.eq.s32.totalorder %v1025_v46, 2  ;;  %vm1027_vm12 = vcmp.eq.s32.totalorder %v1025_v46, 0 }
  0xca   :  { %v1304_v34 = vshll.u32 %v1303_v27, 30  ;;  %vm1026_vm13 = vcmp.lt.s32.totalorder %v1025_v46, 2  ;;  %v1327_v60 = vsub.s32 4, %v1303_v27 }
  0xcb   :  { %v1011_v54 = vor.u32 4788187, %v1010_v22  ;;  %v1014_v47 = vcvt.s32.f32 %v1007_v23 }
  0xcc   :  { %v1305_v51 = vsub.s32 %v1301_v5, %v1304_v34  ;;  %v1328_v62 = vsel %vm1243_vm15, %v1327_v60, %v1303_v27 }
  0xcd   :  { %v1012_v50 = vand.u32 2147483647, %v1011_v54 }
  0xce   :  { %v1307_v12 = vsub.s32 0, %v1305_v51 }
  0xcf   :  { %v1015_v49 = vmul.f32 %v1014_v47, %v1012_v50 }
  0xd0   :  { %v1469_v61 = vmin.u32 %v1307_v12, %v1305_v51 }
  0xd1   :  { %v1016_v55 = vxor.u32 2147483648, %v1015_v49 }
  0xd2   :  { %v1309_v44 = vclz %v1469_v61 }
  0xd3   :  { %v1017_v45 = vsel %vm934_vm8, %v1016_v55, %v1015_v49 }
  0xd4   :  { %v1020_v53 = vsel %vm933_vm10, %v1831_v2, %v1017_v45  ;;  %v1470_v13 = vadd.s32 4294967294, %v1309_v44  ;;  %v1330_v2 = vsel %vm1242_vm0, 0, %v1328_v62 }
  0xd5   :  { %1541 = vcosq.f32 %v1020_v53  ;;  %v1334_v3 = vand.u32 3, %v1330_v2 }
  0xd6   :  { %1543 = vsinq.f32 %v1020_v53  ;;  %vm1471_vm6 = vcmp.lt.s32.totalorder %v1470_v13, 0 }
  0xd7   :  { %v1312_v29 = vsel %vm1471_vm6, 0, %v1470_v13  ;;  %vm1339_vm1 = vcmp.eq.s32.totalorder %v1334_v3, 2  ;;  %vm1336_vm2 = vcmp.eq.s32.totalorder %v1334_v3, 0  ;;  %vm1335_vm3 = vcmp.lt.s32.totalorder %v1334_v3, 2 }
  0xd8   :  { %v1313_v31 = vsub.s32 32, %v1312_v29  ;;  %v1314_v48 = vshll.u32 %v1305_v51, %v1312_v29  ;;  %v1317_v16 = vsub.s32 4294967266, %v1312_v29 }
  0xda   :  { %v1315_v32 = vshrl.u32 %v1297_v30, %v1313_v31  ;;  %v1318_v42 = vadd.s32 127, %v1317_v16 }
  0xdc   :  { %v1316_v18 = vor.u32 %v1315_v32, %v1314_v48  ;;  %v1319_v10 = vshll.u32 %v1318_v42, 23 }
  0xde   :  { %v1320_v14 = vor.u32 4788187, %v1319_v10  ;;  %v1323_v56 = vcvt.s32.f32 %v1316_v18 }
  0xdf   :  { %v1542_v36 = vpop.eup %1541 }
  0xe0   :  { %v1544_v8 = vpop.eup %1543  ;;  %v1031_v20 = vxor.u32 2147483648, %v1542_v36  ;;  %v1321_v11 = vand.u32 2147483647, %v1320_v14 }
  0xe1   :  { %v1028_v15 = vxor.u32 2147483648, %v1544_v8 }
  0xe2   :  { %v1032_v39 = vsel %vm1030_vm11, %v1031_v20, %v1544_v8  ;;  %v1324_v59 = vmul.f32 %v1323_v56, %v1321_v11 }
  0xe3   :  { %v1029_v35 = vsel %vm1027_vm12, %v1542_v36, %v1028_v15 }
  0xe4   :  { %v1033_v57 = vsel %vm1026_vm13, %v1029_v35, %v1032_v39  ;;  %v1325_v7 = vxor.u32 2147483648, %v1324_v59 }
  0xe5   :  { %v1034_v28 = vsel %vm1024_vm14, nan, %v1033_v57 }
  0xe6   :  { %v1326_v21 = vsel %vm1243_vm15, %v1325_v7, %v1324_v59 }
  0xe7   :  { %v1329_v4 = vsel %vm1242_vm0, %v2055_v1, %v1326_v21 }
  0xe8   :  { %1545 = vcosq.f32 %v1329_v4 }
  0xe9   :  { %1547 = vsinq.f32 %v1329_v4 }
  0xf2   :  { %v1546_v63 = vpop.eup %1545 }
  0xf3   :  { %v1548_v43 = vpop.eup %1547  ;;  %v1340_v6 = vxor.u32 2147483648, %v1546_v63 }
  0xf4   :  { %v1337_v19 = vxor.u32 2147483648, %v1548_v43 }
  0xf5   :  { %v1341_v9 = vsel %vm1339_vm1, %v1340_v6, %v1548_v43 }
  0xf6   :  { %v1338_v26 = vsel %vm1336_vm2, %v1546_v63, %v1337_v19 }
  0xf7   :  { %v1342_v0 = vsel %vm1335_vm3, %v1338_v26, %v1341_v9 }
  0xf8   :  { %v1343_v52 = vsel %vm1333_vm4, nan, %v1342_v0 }
  0xf9 LB: > { %1615 = dma.done.wait [#allocation3], 48  ;;  %s1625_s1 = sphi %s1623_s1, %s1355_s1  }
  0xfa   : > { %1616 = vsyncadd [#allocation3], 4294967248  ;;  %s1355_s1 = sadd.s32 1, %s1625_s1  }
  0xfb   : > { %p1352_p2 = scmp.ge.s32.totalorder %s1355_s1, 16  }
  0xfc   :  { %v1359_v33 = vld [vmem:[#allocation2] sm:$0xff] (%p1352_p2)  ;;  %v1360_v5 = vld [vmem:[#allocation2 + $0x8] sm:$0xff] (%p1352_p2)  ;;  %v1361_v23 = vld [vmem:[#allocation2 + $0x10] sm:$0xff] (%p1352_p2)  ;;  %vm1379_vm5 = vcmask (%p1352_p2), 359424   ;;  %s1637_s2 = smov (%p1352_p2), [#allocation6]  }
  0xfd   :  { %1354 = sbr.rel (!%p1352_p2) target bundleno = 249 (0xf9), region = 51  ;;  %v1365_v22 = vmul.f32 (%p1352_p2), 17.320509, %v1359_v33  ;;  %v1366_v25 = vmul.f32 (%p1352_p2), 17.320509, %v1360_v5  ;;  %v1362_v54 = vld [vmem:[#allocation2 + $0x18] sm:$0xff] (%p1352_p2) }
  0xfe   :  { %v1367_v1 = vmul.f32 (%p1352_p2), 17.320509, %v1361_v23  ;;  %v1363_v47 = vld [vmem:[#allocation2 + $0x20] sm:$0xff] (%p1352_p2)  ;;  %v1364_v27 = vld [vmem:[#allocation2 + $0x28] sm:$0xff] (%p1352_p2)  ;;  %v1368_v51 = vmul.f32 (%p1352_p2), 17.320509, %v1362_v54 }
  0xff   :  { %v1371_v50 = vadd.f32 (%p1352_p2), %v1365_v22, %v2034_v24  ;;  %v1372_v34 = vadd.f32 (%p1352_p2), %v1366_v25, %v2167_v58  ;;  %s1389_s22 = sshll.u32 (%p1352_p2), %s1637_s2, 4  ;;  %v1369_v55 = vmul.f32 (%p1352_p2), 17.320509, %v1363_v47  ;;  %v1370_v37 = vmul.f32 (%p1352_p2), 17.320509, %v1364_v27  ;;  %s1390_s22 = int_to_ptr.vmem [resolvable:$true] %s1389_s22 }
 0x100   :  { %v1373_v49 = vadd.f32 (%p1352_p2), %v1367_v1, %v1034_v28  ;;  %v1374_v12 = vadd.f32 (%p1352_p2), %v1368_v51, %v2157_v41  ;;  %s1583_s25 = scalar_lea.vmem (%p1352_p2), %s1390_s22, 768  ;;  %p1588_p4 = scmp.lt.s32.totalorder (%p1352_p2), %s1390_s22, %s1390_s22 }
 0x101   :  { %1377 = vst [vmem:[#allocation6] sm:$0xff] (%p1352_p2), %v1371_v50  ;;  %1378 = vst [vmem:[#allocation6 + $0x8] sm:$0xff] (%p1352_p2), %v1372_v34  ;;  %v1375_v45 = vadd.f32 (%p1352_p2), %v1369_v55, %v2233_v38  ;;  %v1376_v53 = vadd.f32 (%p1352_p2), %v1370_v37, %v1343_v52  ;;  %p1584_p3 = scmp.ne.s32.totalorder (%p1352_p2), %s1390_s22, %s1583_s25  ;;  %p1589_p5 = scmp.lt.s32.totalorder (%p1352_p2), %s1583_s25, %s1583_s25 }
 0x102   :  { %1380 = vst.msk [vmem:[#allocation6 + $0x10] sm:$0xff] (%p1352_p2), %vm1379_vm5, %v1373_v49  ;;  %1381 = vst [vmem:[#allocation6 + $0x18] sm:$0xff] (%p1352_p2), %v1374_v12 }
 0x103   :  { %1382 = vst [vmem:[#allocation6 + $0x20] sm:$0xff] (%p1352_p2), %v1375_v45  ;;  %1383 = vst.msk [vmem:[#allocation6 + $0x28] sm:$0xff] (%p1352_p2), %vm1379_vm5, %v1376_v53  ;;  %p1590_p6 = por (%p1352_p2), %p1589_p5, %p1588_p4 }
 0x105   :  { %p1591_p7 = pnand %p1590_p6, %p1584_p3 }
 0x107   :  { %1594 = shalt.err (!%p1591_p7)
}
 0x108   :  { %s1595_s0 = scalar_lea.hbm %s2269_s3, 768 }
 0x109   :  { %p1596_p8 = scmp.ne.s32.totalorder %s2269_s3, %s1595_s0  ;;  %p1599_p9 = scmp.lt.u32.totalorder %s1595_s0, %s2269_s3 }
 0x10b   :  { %p1601_p10 = pnand %p1599_p9, %p1596_p8 }
 0x10d   :  { %1604 = shalt.err (!%p1601_p10)
}
 0x10e   :  { %s1638_s5 = smov 384   ;;  %s1639_s6 = smov 24  }
 0x10f   :  { %1395 = dma.vmem_to_hbm [thread:$0]  %s1390_s22, 768, %s2269_s3, [#allocation7], %s1638_s5, %s1638_s5, %s1639_s6  }
 0x110   :  { %1617 = dma.done.wait [#allocation7], 768  }
 0x111   :  { %1618 = vsyncadd [#allocation7], 4294966528 }
 0x112   :  { %1399 = vsyncpa [#allocation7], 1 }
 0x113   :  { %1400 = vsyncmov [#allocation3] }
 0x116   :  { %s1401_s9 = vpop.sfrf %1400 }
 0x117   :  { %p1472_p11 = scmp.ne.s32.totalorder %s1401_s9, 0 }
 0x119   :  { %1405 = shalt.err (%p1472_p11)  }

</bundles_post_ra>
